<compile_context>
chip_gen: v6e
topology: v6e:2x2x1
jax: 0.10.0
libtpu: 0.0.40
codegen_flags: <defaults>
</compile_context>

<pallas_src>
import functools

import jax
import jax.numpy as jnp
from jax.experimental import pallas as pl
from jax.experimental.pallas import tpu as pltpu


def _cosent_kernel(lab_ref, a_ref, b_ref, out_ref, sim_acc):
    """One D-tile of the row-wise dot-product; pairwise logsumexp on last tile."""
    k = pl.program_id(0)

    @pl.when(k == 0)
    def _init():
        sim_acc[...] = jnp.zeros_like(sim_acc)

    # Partial cosine similarity for this D tile (upcast in-kernel; inputs
    # arrive at native dtype so bf16 halves the DMA'd bytes).
    a = a_ref[...].astype(jnp.float32)                     # (B, TILE_D)
    b = b_ref[...].astype(jnp.float32)                     # (B, TILE_D)
    sim_acc[...] += jnp.sum(a * b, axis=1, keepdims=True)  # (B, 1)

    @pl.when(k == pl.num_programs(0) - 1)
    def _finalize():
        sim_col = sim_acc[...] * 20.0          # (B, 1)
        # Single small transpose (XLU) -- bit-identical to sim_col, so the
        # diagonal of diff is exactly zero (always masked anyway).
        sim_row = jnp.transpose(sim_col)       # (1, B)
        lab_col = lab_ref[...]                 # (B, 1) int32
        lab_row = jnp.transpose(lab_col)       # (1, B)

        diff = sim_col - sim_row               # (B, B): sim[i] - sim[j]
        keep = lab_col < lab_row               # (B, B): label[i] < label[j]
        masked = jnp.where(keep, diff, -jnp.inf)   # fused mask

        # Stable logsumexp over all kept pairs plus one prepended zero.
        row_max = jnp.max(masked, axis=1, keepdims=True)               # (B, 1)
        m = jnp.maximum(jnp.max(row_max, axis=0, keepdims=True), 0.0)  # (1, 1)
        e = jnp.exp(masked - m)                                        # (B, B)
        s = jnp.sum(jnp.sum(e, axis=1, keepdims=True), axis=0, keepdims=True)
        s = s + jnp.exp(0.0 - m)
        out_ref[...] = m + jnp.log(s)


@functools.partial(jax.jit, static_argnames=("tile_d",))
def cosent_loss(reps_a, reps_b, label_ids, *, tile_d=512):
    """CoSENT loss. reps_a, reps_b: (B, D), any float dtype; label_ids: (B,)."""
    B, D = reps_a.shape

    # Tile size must evenly divide D and respect the (8, 128) lane constraint.
    tile_d = min(tile_d, D)
    if D % tile_d != 0 or (tile_d % 128 != 0 and tile_d != D):
        tile_d = D                     # fallback: single block along D
    n_k = D // tile_d

    lab_col = label_ids.reshape(B, 1).astype(jnp.int32)

    grid_spec = pltpu.PrefetchScalarGridSpec(
        num_scalar_prefetch=0,
        grid=(n_k,),
        in_specs=[
            pl.BlockSpec((B, 1), lambda k: (0, 0)),       # labels (resident)
            pl.BlockSpec((B, tile_d), lambda k: (0, k)),  # reps_a D-tile
            pl.BlockSpec((B, tile_d), lambda k: (0, k)),  # reps_b D-tile
        ],
        out_specs=pl.BlockSpec((1, 1), lambda k: (0, 0)),
        scratch_shapes=[pltpu.VMEM((B, 1), jnp.float32)],  # sim accumulator
    )

    out = pl.pallas_call(
        _cosent_kernel,
        out_shape=jax.ShapeDtypeStruct((1, 1), jnp.float32),
        grid_spec=grid_spec,
        compiler_params=pltpu.CompilerParams(
            dimension_semantics=("arbitrary",),   # D is a reduction axis
        ),
    )(lab_col, reps_a, reps_b)
    return out[0, 0]


def _cosent_ref(reps_a, reps_b, label_ids):
    """Pure-JAX reference mirroring the PyTorch forward exactly."""
    sim = jnp.sum(
        reps_a.astype(jnp.float32) * reps_b.astype(jnp.float32), axis=1
    ) * 20.0
    diff = sim[:, None] - sim[None, :]
    labels = (label_ids[:, None] < label_ids[None, :]).astype(jnp.int32)
    diff = diff - (1 - labels) * 1.0e12
    flat = jnp.concatenate([jnp.zeros((1,), jnp.float32), diff.reshape(-1)], axis=0)
    return jax.scipy.special.logsumexp(flat)


if __name__ == "__main__":
    key = jax.random.PRNGKey(0)
    k_a, k_b, k_l = jax.random.split(key, 3)

    B, D = 8, 256
    reps_a = jax.random.normal(k_a, (B, D), dtype=jnp.float32)
    reps_b = jax.random.normal(k_b, (B, D), dtype=jnp.float32)
    # module expects L2-normalized representations
    reps_a = reps_a / jnp.linalg.norm(reps_a, axis=1, keepdims=True)
    reps_b = reps_b / jnp.linalg.norm(reps_b, axis=1, keepdims=True)
    label_ids = jax.random.randint(k_l, (B,), 0, 2, dtype=jnp.int32)

    # f32 inputs, D split into two 128-wide tiles (exercises init/acc/finalize).
    loss = jax.block_until_ready(cosent_loss(reps_a, reps_b, label_ids, tile_d=128))
    ref = _cosent_ref(reps_a, reps_b, label_ids)
    assert jnp.allclose(loss, ref, rtol=1e-5, atol=1e-5), (loss, ref)

    # Native bf16 inputs: half the HBM bytes; kernel upcasts per-tile in VMEM.
    a16 = reps_a.astype(jnp.bfloat16)
    b16 = reps_b.astype(jnp.bfloat16)
    loss16 = jax.block_until_ready(cosent_loss(a16, b16, label_ids, tile_d=128))
    ref16 = _cosent_ref(a16, b16, label_ids)
    assert jnp.allclose(loss16, ref16, rtol=1e-3, atol=1e-3), (loss16, ref16)

    print("KERNEL_OK")
</pallas_src>

<mosaic_0001>
module attributes {stable_mosaic.version = 11 : i64} {
  func.func @_cosent_kernel(%arg0: i32, %arg1: memref<8x1xi32, #tpu.memory_space<vmem>>, %arg2: memref<8x128xf32, #tpu.memory_space<vmem>>, %arg3: memref<8x128xf32, #tpu.memory_space<vmem>>, %arg4: memref<1x1xf32, #tpu.memory_space<vmem>>, %arg5: memref<8x1xf32, #tpu.memory_space<vmem>>) attributes {dimension_semantics = [#tpu.dimension_semantics<arbitrary>], iteration_bounds = array<i64: 2>, scalar_prefetch = 0 : i64, scratch_operands = 1 : i64, tpu.core_type = #tpu.core_type<tc>, window_params = [{pipeline_mode = #tpu.pipeline_mode<synchronous>, transform_indices = @transform_0, window_bounds = array<i64: 8, 1>}, {transform_indices = @transform_1, window_bounds = array<i64: 8, 128>}, {transform_indices = @transform_2, window_bounds = array<i64: 8, 128>}, {pipeline_mode = #tpu.pipeline_mode<synchronous>, transform_indices = @transform_3, window_bounds = array<i64: 1, 1>}]} {
    %c0_i32 = arith.constant 0 : i32
    %0 = arith.cmpi eq, %arg0, %c0_i32 : i32
    %1 = arith.extui %0 : i1 to i32
    %c0_i32_0 = arith.constant 0 : i32
    %2 = arith.cmpi ne, %1, %c0_i32_0 : i32
    scf.if %2 {
      %cst_9 = arith.constant 0.000000e+00 : f32
      %14 = vector.broadcast %cst_9 : f32 to vector<8x1xf32>
      %c0_10 = arith.constant 0 : index
      %c0_11 = arith.constant 0 : index
      %15 = vector.load %arg5[%c0_10, %c0_11] : memref<8x1xf32, #tpu.memory_space<vmem>>, vector<8x1xf32>
      tpu.vector_store %arg5[%c0_10, %c0_11], %14 {strides = array<i32>} : memref<8x1xf32, #tpu.memory_space<vmem>>, vector<8x1xf32>,
    } else {
    }
    %c0 = arith.constant 0 : index
    %c0_1 = arith.constant 0 : index
    %3 = vector.load %arg2[%c0, %c0_1] : memref<8x128xf32, #tpu.memory_space<vmem>>, vector<8x128xf32>
    %c0_2 = arith.constant 0 : index
    %c0_3 = arith.constant 0 : index
    %4 = vector.load %arg3[%c0_2, %c0_3] : memref<8x128xf32, #tpu.memory_space<vmem>>, vector<8x128xf32>
    %c0_4 = arith.constant 0 : index
    %c0_5 = arith.constant 0 : index
    %5 = vector.load %arg5[%c0_4, %c0_5] : memref<8x1xf32, #tpu.memory_space<vmem>>, vector<8x1xf32>
    %6 = arith.mulf %3, %4 : vector<8x128xf32>
    %cst = arith.constant dense<0.000000e+00> : vector<8xf32>
    %7 = vector.multi_reduction <add>, %6, %cst [1] : vector<8x128xf32> to vector<8xf32>
    %8 = vector.shape_cast %7 : vector<8xf32> to vector<8x1xf32>
    %9 = arith.addf %5, %8 : vector<8x1xf32>
    %c0_6 = arith.constant 0 : index
    %c0_7 = arith.constant 0 : index
    %10 = vector.load %arg5[%c0_6, %c0_7] : memref<8x1xf32, #tpu.memory_space<vmem>>, vector<8x1xf32>
    tpu.vector_store %arg5[%c0_6, %c0_7], %9 {strides = array<i32>} : memref<8x1xf32, #tpu.memory_space<vmem>>, vector<8x1xf32>,
    %c1_i32 = arith.constant 1 : i32
    %11 = arith.cmpi eq, %arg0, %c1_i32 : i32
    %12 = arith.extui %11 : i1 to i32
    %c0_i32_8 = arith.constant 0 : i32
    %13 = arith.cmpi ne, %12, %c0_i32_8 : i32
    scf.if %13 {
      %c0_9 = arith.constant 0 : index
      %c0_10 = arith.constant 0 : index
      %14 = vector.load %arg5[%c0_9, %c0_10] : memref<8x1xf32, #tpu.memory_space<vmem>>, vector<8x1xf32>
      %cst_11 = arith.constant 2.000000e+01 : f32
      %15 = vector.broadcast %cst_11 : f32 to vector<8x1xf32>
      %16 = arith.mulf %14, %15 : vector<8x1xf32>
      %17 = tpu.transpose %16, [1, 0] : vector<8x1xf32> -> vector<1x8xf32>
      %c0_12 = arith.constant 0 : index
      %c0_13 = arith.constant 0 : index
      %18 = vector.load %arg1[%c0_12, %c0_13] : memref<8x1xi32, #tpu.memory_space<vmem>>, vector<8x1xi32>
      %19 = tpu.transpose %18, [1, 0] : vector<8x1xi32> -> vector<1x8xi32>
      %20 = vector.broadcast %16 : vector<8x1xf32> to vector<8x8xf32>
      %21 = vector.broadcast %17 : vector<1x8xf32> to vector<8x8xf32>
      %22 = arith.subf %20, %21 : vector<8x8xf32>
      %23 = vector.broadcast %18 : vector<8x1xi32> to vector<8x8xi32>
      %24 = vector.broadcast %19 : vector<1x8xi32> to vector<8x8xi32>
      %25 = arith.cmpi slt, %23, %24 : vector<8x8xi32>
      %cst_14 = arith.constant 0xFF800000 : f32
      %26 = vector.broadcast %cst_14 : f32 to vector<8x8xf32>
      %27 = arith.select %25, %22, %26 : vector<8x8xi1>, vector<8x8xf32>
      %cst_15 = arith.constant dense<0xFF800000> : vector<8xf32>
      %28 = vector.multi_reduction <maximumf>, %27, %cst_15 [1] : vector<8x8xf32> to vector<8xf32>
      %29 = vector.shape_cast %28 : vector<8xf32> to vector<8x1xf32>
      %cst_16 = arith.constant dense<0xFF800000> : vector<1xf32>
      %30 = vector.multi_reduction <maximumf>, %29, %cst_16 [0] : vector<8x1xf32> to vector<1xf32>
      %31 = vector.shape_cast %30 : vector<1xf32> to vector<1x1xf32>
      %cst_17 = arith.constant 0.000000e+00 : f32
      %32 = vector.broadcast %cst_17 : f32 to vector<1x1xf32>
      %33 = arith.maximumf %31, %32 : vector<1x1xf32>
      %34 = vector.broadcast %33 : vector<1x1xf32> to vector<8x8xf32>
      %35 = arith.subf %27, %34 : vector<8x8xf32>
      %36 = math.exp %35 : vector<8x8xf32>
      %cst_18 = arith.constant dense<0.000000e+00> : vector<8xf32>
      %37 = vector.multi_reduction <add>, %36, %cst_18 [1] : vector<8x8xf32> to vector<8xf32>
      %38 = vector.shape_cast %37 : vector<8xf32> to vector<8x1xf32>
      %cst_19 = arith.constant dense<0.000000e+00> : vector<1xf32>
      %39 = vector.multi_reduction <add>, %38, %cst_19 [0] : vector<8x1xf32> to vector<1xf32>
      %40 = vector.shape_cast %39 : vector<1xf32> to vector<1x1xf32>
      %cst_20 = arith.constant 0.000000e+00 : f32
      %41 = vector.broadcast %cst_20 : f32 to vector<1x1xf32>
      %42 = arith.subf %41, %33 : vector<1x1xf32>
      %43 = math.exp %42 : vector<1x1xf32>
      %44 = arith.addf %40, %43 : vector<1x1xf32>
      %45 = math.log %44 : vector<1x1xf32>
      %46 = arith.addf %33, %45 : vector<1x1xf32>
      %c0_21 = arith.constant 0 : index
      %c0_22 = arith.constant 0 : index
      %47 = vector.load %arg4[%c0_21, %c0_22] : memref<1x1xf32, #tpu.memory_space<vmem>>, vector<1x1xf32>
      tpu.vector_store %arg4[%c0_21, %c0_22], %46 {strides = array<i32>} : memref<1x1xf32, #tpu.memory_space<vmem>>, vector<1x1xf32>,
    } else {
    }
    return
  }
  func.func @transform_0(%arg0: i32) -> (i32, i32) {
    %c0_i32 = arith.constant 0 : i32
    %c0_i32_0 = arith.constant 0 : i32
    %c0_i32_1 = arith.constant 0 : i32
    return %c0_i32, %c0_i32_0 : i32, i32
  }
  func.func @transform_1(%arg0: i32) -> (i32, i32) {
    %c0_i32 = arith.constant 0 : i32
    %c0_i32_0 = arith.constant 0 : i32
    return %c0_i32, %arg0 : i32, i32
  }
  func.func @transform_2(%arg0: i32) -> (i32, i32) {
    %c0_i32 = arith.constant 0 : i32
    %c0_i32_0 = arith.constant 0 : i32
    return %c0_i32, %arg0 : i32, i32
  }
  func.func @transform_3(%arg0: i32) -> (i32, i32) {
    %c0_i32 = arith.constant 0 : i32
    %c0_i32_0 = arith.constant 0 : i32
    %c0_i32_1 = arith.constant 0 : i32
    return %c0_i32, %c0_i32_0 : i32, i32
  }
}

</mosaic_0001>

<bundles_post_ra>
// kernel: cosent_loss.1
= control target key start
LH: loop header
LB: loop body
LE: loop exit
PB: predicated region body
PF: predicated region fallthrough
CT: control target
= control target key end

     0   :  { %8 = vsyncpa [#allocation4], 0  ;;  %s820_s0 = inlined_call_operand.vmem [shape: s32[8,1], index: 0, kind: input, shape index: {}]   ;;  %s821_s1 = inlined_call_operand.hbm [shape: f32[8,256], index: 1, kind: input, shape index: {}]   ;;  %s822_s2 = inlined_call_operand.hbm [shape: f32[8,256], index: 2, kind: input, shape index: {}]   ;;  %s823_s3 = inlined_call_operand.hbm [shape: f32[1,1], index: 3, kind: output, shape index: {}]  }
   0x1   :  { %10 = vsyncpa [#allocation4 + $0x1], 0 }
   0x2   :  { %11 = vsyncpa [#allocation7], 0 }
   0x3   :  { %13 = vsyncpa [#allocation7 + $0x1], 0 }
   0x4   :  { %14 = vsyncpa [#allocation5], 0  ;;  %s654_s12 = smov 0   ;;  %s656_s13 = smov 0  }
   0x5   :  { %s658_s14 = smov 0   ;;  %s660_s15 = smov 0  }
   0x6 LB: > { %s673_s16 = sadd.s32 4294967295, %s627_s15   ;;  %s676_s17 = sadd.s32 1, %s627_s15   ;;  %s627_s15 = sphi %s660_s15, %s835_s15   ;;  %s623_s14 = sphi %s658_s14, %s834_s14   ;;  %s619_s13 = sphi %s656_s13, %s833_s13   ;;  %s615_s12 = sphi %s654_s12, %s832_s12  }
   0x7   : > { %s45_s18 = ssub.s32 %s627_s15, %s676_s17  ;;  %s48_s19 = sadd.s32 1, %s623_s14 }
   0x8   : > { %p46_p0 = scmp.eq.s32.totalorder %s45_s18, 0  ;;  %p55_p1 = scmp.ne.s32.totalorder %s623_s14, %s619_s13 }
   0x9   : > { %p56_p2 = scmp.eq.s32.totalorder %s627_s15, 0  ;;  %p61_p3 = scmp.ne.s32.totalorder %s619_s13, %s615_s12 }
   0xa   : > { %s686_s20 = scalar_select %p46_p0, %s623_s14, %s48_s19  }
   0xb   : > { %p57_p4 = por %p56_p2, %p55_p1  ;;  %p62_p5 = scmp.eq.s32.totalorder %s673_s16, 0 }
   0xc   : > { %p459_p6 = scmp.lt.s32.totalorder %s627_s15, 2  ;;  %s695_s22 = sand.u32 1, %s623_s14  }
   0xd   : > { %p690_p7 = por %p62_p5, %p61_p3  ;;  %s431_s23 = sshll.u32 %s695_s22, 3 }
   0xe   : > { %s432_s24 = sshll.u32 %s627_s15, 7  ;;  %s139_s28 = scalar_lea.vmem [#allocation3], %s431_s23 }
   0xf   : > { %s825_s21 = scalar_select %p690_p7, 1, 0 }
  0x10   : > { %s704_s27 = scalar_lea.hbm %s821_s1, %s432_s24  ;;  %s146_s29 = sshll.u32 %s139_s28, 4  ;;  %s708_s29 = int_to_ptr.vmem [resolvable:$true] %s146_s29 }
  0x11   : > { %p710_p8 = pnand %p459_p6, %p57_p4  ;;  %s136_s4 = scalar_lea.sflag [#allocation4], %s695_s22 }
  0x12   : > { %s505_s5 = scalar_lea.hbm %s704_s27, 128  ;;  %s510_s8 = scalar_lea.hbm %s821_s1, 256 }
  0x13   : > { %p506_p11 = scmp.ne.s32.totalorder %s704_s27, %s505_s5  ;;  %p507_p12 = pneg %p710_p8 }
  0x14   : > { %p511_p1 = scmp.lt.s32.totalorder %s704_s27, %s821_s1  ;;  %p512_p2 = scmp.lt.s32.totalorder %s510_s8, %s505_s5 }
  0x15   : > { %p508_p13 = pnand %p507_p12, %p506_p11 }
  0x16   : > { %p513_p3 = por %p512_p2, %p511_p1 }
  0x17   : > { %p509_p0 = pneg %p508_p13 }
  0x19   : > { %p514_p4 = pnand %p513_p3, %p509_p0 }
  0x1b   : > { %517 = shalt.err (!%p514_p4)
}
  0x1c   : > { %s518_s11 = scalar_lea.vmem %s708_s29, 128  ;;  %s629_s12 = smov [#allocation3]  }
  0x1d   : > { %p519_p5 = scmp.ne.s32.totalorder %s708_s29, %s518_s11  ;;  %s523_s18 = sshll.u32 %s629_s12, 4  ;;  %s524_s18 = int_to_ptr.vmem [resolvable:$false] %s523_s18 }
  0x1e   : > { %s525_s19 = scalar_lea.vmem %s524_s18, 256  ;;  %p526_p13 = scmp.lt.s32.totalorder %s708_s29, %s524_s18 }
  0x1f   : > { %p521_p6 = pnand %p519_p5, %p507_p12  ;;  %p527_p9 = scmp.lt.s32.totalorder %s525_s19, %s518_s11 }
  0x21   : > { %p522_p11 = pneg %p521_p6  ;;  %p528_p10 = por %p527_p9, %p526_p13 }
  0x23   : > { %p529_p1 = pnand %p528_p10, %p522_p11 }
  0x25   : > { %532 = shalt.err (!%p529_p1)
}
  0x26   : > { %455 = dma.hbm_to_vmem [thread:$0]  (!%p710_p8), %s704_s27, 128, %s708_s29, %s136_s4  }
  0x27   : > { %p827_p0 = scmp.lt.s32.totalorder %s627_s15, 3  ;;  %p828_p2 = scmp.ge.s32.totalorder %s627_s15, 1 }
  0x28   : > { %s754_s5 = scalar_lea.hbm %s822_s2, %s432_s24  ;;  %s157_s6 = scalar_lea.vmem [#allocation6], %s431_s23 }
  0x29   : > { %p745_p3 = pnand %p828_p2, %p827_p0  ;;  %s164_s7 = sshll.u32 %s157_s6, 4  ;;  %s165_s7 = int_to_ptr.vmem [resolvable:$true] %s164_s7 }
  0x2a   : > { %s154_s27 = scalar_lea.sflag [#allocation7], %s695_s22  ;;  %s533_s29 = scalar_lea.hbm %s754_s5, 128 }
  0x2b   : > { %s829_s25 = scalar_select %p745_p3, 1, 0 }
  0x2c   : > { %p534_p9 = scmp.ne.s32.totalorder %s754_s5, %s533_s29  ;;  %s538_s8 = scalar_lea.hbm %s822_s2, 256 }
  0x2d   : > { %p539_p5 = scmp.lt.s32.totalorder %s754_s5, %s822_s2  ;;  %p540_p6 = scmp.lt.s32.totalorder %s538_s8, %s533_s29 }
  0x2e   : > { %p536_p10 = pnand %p534_p9, %p507_p12 }
  0x2f   : > { %p541_p11 = por %p540_p6, %p539_p5 }
  0x30   : > { %p537_p4 = pneg %p536_p10 }
  0x32   : > { %p542_p13 = pnand %p541_p11, %p537_p4 }
  0x34   : > { %545 = shalt.err (!%p542_p13)
}
  0x35   : > { %s546_s23 = scalar_lea.vmem %s165_s7, 128  ;;  %s630_s22 = smov [#allocation6]  }
  0x36   : > { %p547_p1 = scmp.ne.s32.totalorder %s165_s7, %s546_s23  ;;  %s551_s10 = sshll.u32 %s630_s22, 4  ;;  %s552_s10 = int_to_ptr.vmem [resolvable:$false] %s551_s10 }
  0x37   : > { %s553_s11 = scalar_lea.vmem %s552_s10, 256  ;;  %p554_p9 = scmp.lt.s32.totalorder %s165_s7, %s552_s10 }
  0x38   : > { %p549_p0 = pnand %p547_p1, %p507_p12  ;;  %p555_p10 = scmp.lt.s32.totalorder %s553_s11, %s546_s23 }
  0x3a   : > { %p550_p2 = pneg %p549_p0  ;;  %p556_p7 = por %p555_p10, %p554_p9 }
  0x3c   : > { %p557_p3 = pnand %p556_p7, %p550_p2 }
  0x3e   : > { %560 = shalt.err (!%p557_p3)
}
  0x3f   : > { %458 = dma.hbm_to_vmem [thread:$0]  (!%p710_p8), %s754_s5, 128, %s165_s7, %s154_s27  }
  0x40   : > { %p830_p4 = scmp.ne.s32.totalorder %s829_s25, 0 }
  0x41   : > { %s175_s12 = sand.u32 (!%p830_p4), 1, %s619_s13   ;;  %p831_p12 = scmp.ne.s32.totalorder (!%p830_p4), %s825_s21, 0 }
  0x42   : > { %173 = sbr.rel (%p830_p4) target bundleno = 727 (0x2d7), region = 32  ;;  %s436_s18 = sshll.u32 (!%p830_p4), %s175_s12, 3 }
  0x43   : > { %s176_s19 = scalar_lea.sflag (!%p830_p4), [#allocation4], %s175_s12  ;;  %s179_s26 = scalar_lea.vmem (!%p830_p4), [#allocation3], %s436_s18 }
  0x47   : > { %602 = dma.done.wait (%p831_p12), %s176_s19, 128  }
  0x48   : > { %604 = vsyncadd (%p831_p12), %s176_s19, 4294967168  ;;  %s185_s28 = scalar_lea.sflag [#allocation7], %s175_s12  ;;  %s188_s6 = scalar_lea.vmem [#allocation6], %s436_s18 }
  0x49   : > { %606 = dma.done.wait (%p831_p12), %s185_s28, 128  }
  0x4a   : > { %608 = vsyncadd (%p831_p12), %s185_s28, 4294967168  ;;  %p438_p7 = scmp.ne.s32.totalorder %s673_s16, 0 }
  0x4c   : > { %214 = sbr.rel (%p438_p7) target bundleno = 83 (0x53), region = 44 }
  0x51   : > { %vm215_vm0 = vcmask 7168   ;;  %v631_v0 = vmov 0.0  }
  0x52   : > { %216 = vst.msk [vmem:[#allocation2] sm:$0xff] %vm215_vm0, %v631_v0 }
  0x53 PF: > { %v217_v1 = vld [vmem:[%s179_s26] sm:$0xff]  ;;  %v218_v2 = vld [vmem:[%s188_s6] sm:$0xff]  ;;  %vm224_vm1 = vcmask 7168   ;;  %p439_p8 = scmp.ne.s32.totalorder %s673_s16, 1 }
  0x54   : > { %v220_v3 = vmul.f32 %v218_v2, %v217_v1 }
  0x56   : > { %221 = vadd.xlane.f32.xlu0 %v220_v3 }
  0x59   : > { %v219_v4 = vld [vmem:[#allocation2] sm:$0xff] }
  0xde   : > { %229 = sbr.rel (%p439_p8) target bundleno = 712 (0x2c8), region = 48 }
  0xdf   : > { %v222_v5 = vpop.xlane.xlu0 %221 }
  0xe0   : > { %v223_v6 = vadd.f32 %v222_v5, %v219_v4 }
  0xe2   : > { %225 = vst.msk [vmem:[#allocation2] sm:$0xff] %vm224_vm1, %v223_v6 }
  0xe3   : > { %v632_v8 = vmov 0   ;;  %v264_v10 = vld [vmem:[%s820_s0] sm:$0xff]  ;;  %v302_v11 = vlaneseq  ;;  %vm316_vm2 = vcmask 64512   ;;  %vm346_vm4 = vcmask 0  }
  0xe4   : > { %498 = vset.pattern.permute.xlu0 %v632_v8 }
  0xe5   : > { %v303_v12 = vshrl.u32 %v302_v11, 7 }
  0xe7   : > { %v304_v13 = vsub.s32 0, %v303_v12 }
  0xe9   : > { %v230_v7 = vld [vmem:[#allocation2] sm:$0xff] }
  0xea   : > { %v231_v9 = vmul.f32 20.0, %v230_v7 }
  0xec   : > { %232 = vxpose.xlu1.b32.start.end [1/1] (short) (narrow) %v231_v9, 8  ;;  %299 = vperm.xlu0 %498, %v231_v9  }
  0xf0   : > { %265 = vxpose.xlu1.b32.start.end [1/1] (short) (narrow) %v264_v10, 8  ;;  %308 = vperm.xlu0 %498, %v264_v10  }
 0x167   : > { %v300_v14 = vpop.permute.xlu0 %299 }
 0x168   : > { %v248_v15 = vpop.trf.xlu1 }
 0x169   : > { %v305_v16 = vrot.slane %v248_v15, %v304_v13 }
 0x16b   : > { %v306_v19 = vsub.f32 %v300_v14, %v305_v16  ;;  %v309_v20 = vpop.permute.xlu0 %308 }
 0x16c   : > { %v281_v17 = vpop.trf.xlu1 }
 0x16d   : > { %v313_v18 = vrot.slane %v281_v17, %v304_v13 }
 0x16f   : > { %vm314_vm3 = vcmp.lt.s32.totalorder %v309_v20, %v313_v18 }
 0x170   : > { %v315_v21 = vsel %vm314_vm3, %v306_v19, -inf }
 0x171   : > { %v317_v22 = vsel %vm316_vm2, %v315_v21, -inf }
 0x172   : > { %318 = vmax.xlane.f32.xlu0 %v317_v22 }
 0x1fb   : > { %v319_v23 = vpop.xlane.xlu0 %318 }
 0x1fc   : > { %v320_v24 = vrot.slane %v319_v23, 4 }
 0x1fe   : > { %v321_v25 = vmax.f32 %v319_v23, %v320_v24 }
 0x200   : > { %v322_v26 = vrot.slane %v321_v25, 2 }
 0x202   : > { %v323_v27 = vmax.f32 %v321_v25, %v322_v26 }
 0x204   : > { %v324_v28 = vrot.slane %v323_v27, 1 }
 0x206   : > { %v325_v29 = vmax.f32 %v323_v27, %v324_v28 }
 0x208   : > { %v326_v30 = vmax.f32 %v325_v29, 0.0 }
 0x20a   : > { %v327_v31 = vsub.f32 %v315_v21, %v326_v30  ;;  %v339_v35 = vsub.f32 0.0, %v326_v30 }
 0x20c   : > { %v328_v32 = vmul.f32 1.442695, %v327_v31  ;;  %v340_v36 = vmul.f32 1.442695, %v339_v35 }
 0x20e   : > { %499 = vpow2.f32 %v328_v32 }
 0x20f   : > { %501 = vpow2.f32 %v340_v36 }
 0x21b   : > { %v500_v33 = vpop.eup %499 }
 0x21c   : > { %v330_v34 = vsel %vm316_vm2, %v500_v33, 0.0  ;;  %v502_v44 = vpop.eup %501 }
 0x21d   : > { %331 = vadd.xlane.f32.xlu1 %v330_v34 }
 0x2a6   : > { %v332_v37 = vpop.xlane.xlu1 %331 }
 0x2a7   : > { %v333_v38 = vrot.slane %v332_v37, 4 }
 0x2a9   : > { %v334_v39 = vadd.f32 %v333_v38, %v332_v37 }
 0x2ab   : > { %v335_v40 = vrot.slane %v334_v39, 2 }
 0x2ad   : > { %v336_v41 = vadd.f32 %v335_v40, %v334_v39 }
 0x2af   : > { %v337_v42 = vrot.slane %v336_v41, 1 }
 0x2b1   : > { %v338_v43 = vadd.f32 %v337_v42, %v336_v41 }
 0x2b3   : > { %v342_v45 = vadd.f32 %v502_v44, %v338_v43 }
 0x2b5   : > { %503 = vlog2.f32 %v342_v45 }
 0x2c2   : > { %v504_v46 = vpop.eup %503 }
 0x2c3   : > { %v344_v47 = vmul.f32 0.6931472, %v504_v46 }
 0x2c5   : > { %v345_v48 = vadd.f32 %v344_v47, %v326_v30 }
 0x2c7   : > { %347 = vst.msk [vmem:[#allocation8] sm:$0x1] %vm346_vm4, %v345_v48 }
 0x2c8 PF: > { %p460_p3 = scmp.eq.s32.totalorder %s673_s16, 1  ;;  %s633_s25 = smov [#allocation8]  }
 0x2c9   : > { %s355_s5 = sshll.u32 %s633_s25, 4  ;;  %s356_s5 = int_to_ptr.vmem [resolvable:$true] %s355_s5 }
 0x2ca   : > { %s561_s7 = scalar_lea.vmem %s356_s5, 16  ;;  %s567_s27 = scalar_lea.vmem %s356_s5, 32 }
 0x2cb   : > { %p562_p5 = scmp.ne.s32.totalorder %s356_s5, %s561_s7  ;;  %p568_p13 = scmp.lt.s32.totalorder %s356_s5, %s356_s5 }
 0x2cc   : > { %p569_p1 = scmp.lt.s32.totalorder %s567_s27, %s561_s7 }
 0x2cd   : > { %p563_p6 = pnand %p562_p5, %p460_p3 }
 0x2ce   : > { %p570_p0 = por %p569_p1, %p568_p13 }
 0x2cf   : > { %p564_p11 = pneg %p563_p6 }
 0x2d1   : > { %p571_p2 = pnand %p570_p0, %p564_p11 }
 0x2d3   : > { %574 = shalt.err (!%p571_p2)
}
 0x2d4   : > { %449 = dma.vmem_to_hbm [thread:$0]  (%p460_p3), %s356_s5, 16, %s823_s3, [#allocation5]  }
 0x2d5   : > { %610 = dma.done.wait (%p460_p3), [#allocation5], 16  }
 0x2d6   : > { %612 = vsyncadd (%p460_p3), [#allocation5], 4294967280 }
 0x2d7 PF: > { %p17_p9 = scmp.ge.s32.totalorder %s676_s17, 4   ;;  %s832_s12 = smov %s619_s13 }
 0x2d8   : > { %s833_s13 = smov %s623_s14  ;;  %s834_s14 = smov %s686_s20 }
 0x2d9   : > { %s835_s15 = smov %s676_s17  ;;  %19 = sbr.rel (!%p17_p9) target bundleno = 6 (0x6), region = 90 }
 0x2de   :  { %368 = vsyncpa [#allocation4], 1 }
 0x2df   :  { %370 = vsyncpa [#allocation4 + $0x1], 1 }
 0x2e0   :  { %371 = vsyncpa [#allocation7], 1 }
 0x2e1   :  { %373 = vsyncpa [#allocation7 + $0x1], 1 }
 0x2e2   :  { %374 = vsyncpa [#allocation5], 1 }
 0x2e3   :  { %376 = vsyncpa [#allocation5 + $0x1], 1 }

</bundles_post_ra>
